<compile_context>
chip_gen: v7x
topology: tpu7x:2x2x1
jax: 0.10.0
libtpu: 0.0.40
codegen_flags: <defaults>
</compile_context>

<pallas_src>
import functools

import jax
import jax.numpy as jnp
from jax.experimental import pallas as pl
from jax.experimental.pallas import tpu as pltpu


def _mlp_kernel(x_ref, w1_ref, b1_ref, w2_ref, b2_ref, w3_ref, b3_ref,
                w4_ref, b4_ref, o_ref):
    # x_ref: (TB, in_dim)          o_ref: (TB, out_pad)
    # w*_ref: (in, out) bf16 (pre-transposed)   b*_ref: (1, out) f32
    h = x_ref[...].astype(jnp.bfloat16)

    h = jnp.dot(h, w1_ref[...], preferred_element_type=jnp.float32) + b1_ref[...]
    h = jnp.maximum(h, 0.0).astype(jnp.bfloat16)

    h = jnp.dot(h, w2_ref[...], preferred_element_type=jnp.float32) + b2_ref[...]
    h = jnp.maximum(h, 0.0).astype(jnp.bfloat16)

    h = jnp.dot(h, w3_ref[...], preferred_element_type=jnp.float32) + b3_ref[...]
    h = jnp.maximum(h, 0.0).astype(jnp.bfloat16)

    out = jnp.dot(h, w4_ref[...], preferred_element_type=jnp.float32) + b4_ref[...]
    o_ref[...] = out.astype(o_ref.dtype)


def prepare_params(w1, b1, w2, b2, w3, b3, w4, b4, *, param_dtype=jnp.bfloat16):
    """One-time conversion of PyTorch nn.Linear params for the kernel.

    Input layout: w* = (out_features, in_features), b* = (out_features,).
    Output: weights transposed to (in, out) and cast to bf16, biases as f32
    (1, out) rows; the final layer is zero-padded to a 128-lane multiple so
    the kernel's output stores are lane-dense.  Do NOT call this per forward.
    """
    out_dim = int(w4.shape[0])
    out_pad = ((out_dim + 127) // 128) * 128

    def wt(w):
        return jnp.asarray(w, param_dtype).T          # (in, out)

    def br(b):
        return jnp.asarray(b, jnp.float32).reshape(1, -1)

    w1t, w2t, w3t, w4t = wt(w1), wt(w2), wt(w3), wt(w4)
    b1r, b2r, b3r, b4r = br(b1), br(b2), br(b3), br(b4)
    if out_pad != out_dim:
        w4t = jnp.pad(w4t, ((0, 0), (0, out_pad - out_dim)))
        b4r = jnp.pad(b4r, ((0, 0), (0, out_pad - out_dim)))
    params = (w1t, b1r, w2t, b2r, w3t, b3r, w4t, b4r)
    return jax.tree_util.tree_map(jax.device_put, params), out_dim


def _choose_tb(B):
    """Batch tile: >=2 grid steps when B>8 (v7x megacore), cap 256 (MXU fill)."""
    if B <= 8:
        return B
    half = -(-B // 2)            # cdiv(B, 2)
    tb = -(-half // 8) * 8       # round up to the 8-sublane granule
    return min(256, tb)


@functools.partial(jax.jit, static_argnames=("out_dim",))
def mlp_forward(x, w1t, b1r, w2t, b2r, w3t, b3r, w4t, b4r, *, out_dim):
    """MUNIT MLP forward.  x: (B, ...) flattened to (B, in_dim)."""
    B = x.shape[0]
    x2 = x.reshape(B, -1)
    in_dim = x2.shape[1]
    dim = w1t.shape[1]           # hidden width (256 in the module)
    out_pad = w4t.shape[1]       # out_dim rounded up to a 128-lane multiple

    TB = _choose_tb(B)
    nb = pl.cdiv(B, TB)

    wconst = lambda i: (0, 0)    # weights/biases resident across the grid

    weight_bytes = (w1t.size + w2t.size + w3t.size + w4t.size) * w1t.dtype.itemsize
    bias_bytes = (b1r.size + b2r.size + b3r.size + b4r.size) * 4
    cost = pl.CostEstimate(
        flops=2 * B * (in_dim * dim + 2 * dim * dim + dim * out_pad),
        transcendentals=0,
        bytes_accessed=(weight_bytes + bias_bytes
                        + x2.size * x2.dtype.itemsize + B * out_pad * 4),
    )

    out = pl.pallas_call(
        _mlp_kernel,
        out_shape=jax.ShapeDtypeStruct((B, out_pad), jnp.float32),
        grid_spec=pltpu.PrefetchScalarGridSpec(
            num_scalar_prefetch=0,
            grid=(nb,),
            in_specs=[
                pl.BlockSpec((TB, in_dim), lambda i: (i, 0)),
                pl.BlockSpec((in_dim, dim), wconst),
                pl.BlockSpec((1, dim), wconst),
                pl.BlockSpec((dim, dim), wconst),
                pl.BlockSpec((1, dim), wconst),
                pl.BlockSpec((dim, dim), wconst),
                pl.BlockSpec((1, dim), wconst),
                pl.BlockSpec((dim, out_pad), wconst),
                pl.BlockSpec((1, out_pad), wconst),
            ],
            out_specs=pl.BlockSpec((TB, out_pad), lambda i: (i, 0)),
        ),
        compiler_params=pltpu.CompilerParams(
            dimension_semantics=("parallel",)),
        cost_estimate=cost,
    )(x2, w1t, b1r, w2t, b2r, w3t, b3r, w4t, b4r)

    if out_pad != out_dim:
        out = out[:, :out_dim]
    return out.astype(x.dtype)


def mlp_ref(x, w1, b1, w2, b2, w3, b3, w4, b4):
    """Pure-JAX f32 reference mirroring the PyTorch module (for verification)."""
    h = x.reshape(x.shape[0], -1).astype(jnp.float32)
    h = jnp.maximum(h @ w1.T + b1, 0.0)
    h = jnp.maximum(h @ w2.T + b2, 0.0)
    h = jnp.maximum(h @ w3.T + b3, 0.0)
    return h @ w4.T + b4


if __name__ == "__main__":
    # MUNIT-style shapes, kept small: style code (B, in_dim, 1, 1),
    # hidden dim hard-coded to 256 in the module, small out_dim.
    B, in_dim, dim, out_dim = 2, 8, 256, 64

    key = jax.random.PRNGKey(0)
    kx, k1, kb1, k2, kb2, k3, kb3, k4, kb4 = jax.random.split(key, 9)

    x = jax.random.normal(kx, (B, in_dim, 1, 1), dtype=jnp.float32)
    # nn.Linear weights in PyTorch (out_features, in_features) layout.
    w1 = 0.1 * jax.random.normal(k1, (dim, in_dim), dtype=jnp.float32)
    b1 = 0.1 * jax.random.normal(kb1, (dim,), dtype=jnp.float32)
    w2 = 0.1 * jax.random.normal(k2, (dim, dim), dtype=jnp.float32)
    b2 = 0.1 * jax.random.normal(kb2, (dim,), dtype=jnp.float32)
    w3 = 0.1 * jax.random.normal(k3, (dim, dim), dtype=jnp.float32)
    b3 = 0.1 * jax.random.normal(kb3, (dim,), dtype=jnp.float32)
    w4 = 0.1 * jax.random.normal(k4, (out_dim, dim), dtype=jnp.float32)
    b4 = 0.1 * jax.random.normal(kb4, (out_dim,), dtype=jnp.float32)

    # One-time parameter preparation (outside the hot per-call path).
    params, od = prepare_params(w1, b1, w2, b2, w3, b3, w4, b4)

    # bf16 weights/activations with f32 accumulation -> loosened tolerance.
    TOL = 2e-2

    out = mlp_forward(x, *params, out_dim=od)
    out = jax.block_until_ready(out)
    ref = mlp_ref(x, w1, b1, w2, b2, w3, b3, w4, b4)
    assert out.shape == (B, out_dim) and out.dtype == jnp.float32
    assert jnp.allclose(out, ref, rtol=TOL, atol=TOL), (
        float(jnp.max(jnp.abs(out - ref))))

    # Ragged-batch check: B not a multiple of the batch tile (exercises the
    # padded last block / masked writeback path; >=2 grid steps for megacore).
    B2 = 20
    x2 = jax.random.normal(jax.random.PRNGKey(1), (B2, in_dim, 1, 1),
                           dtype=jnp.float32)
    out2 = jax.block_until_ready(mlp_forward(x2, *params, out_dim=od))
    ref2 = mlp_ref(x2, w1, b1, w2, b2, w3, b3, w4, b4)
    assert out2.shape == (B2, out_dim)
    assert jnp.allclose(out2, ref2, rtol=TOL, atol=TOL), (
        float(jnp.max(jnp.abs(out2 - ref2))))

    print("KERNEL_OK")
</pallas_src>

<mosaic_0001>
module attributes {stable_mosaic.version = 11 : i64} {
  func.func @_mlp_kernel(%arg0: i32, %arg1: memref<2x8xf32, #tpu.memory_space<vmem>>, %arg2: memref<8x256xbf16, #tpu.memory_space<vmem>>, %arg3: memref<1x256xf32, #tpu.memory_space<vmem>>, %arg4: memref<256x256xbf16, #tpu.memory_space<vmem>>, %arg5: memref<1x256xf32, #tpu.memory_space<vmem>>, %arg6: memref<256x256xbf16, #tpu.memory_space<vmem>>, %arg7: memref<1x256xf32, #tpu.memory_space<vmem>>, %arg8: memref<256x128xbf16, #tpu.memory_space<vmem>>, %arg9: memref<1x128xf32, #tpu.memory_space<vmem>>, %arg10: memref<2x128xf32, #tpu.memory_space<vmem>>) attributes {dimension_semantics = [#tpu.dimension_semantics<parallel>], iteration_bounds = array<i64: 1>, scalar_prefetch = 0 : i64, scratch_operands = 0 : i64, tpu.core_type = #tpu.core_type<tc>, window_params = [{transform_indices = @transform_0, window_bounds = array<i64: 2, 8>}, {pipeline_mode = #tpu.pipeline_mode<synchronous>, transform_indices = @transform_1, window_bounds = array<i64: 8, 256>}, {pipeline_mode = #tpu.pipeline_mode<synchronous>, transform_indices = @transform_2, window_bounds = array<i64: 1, 256>}, {pipeline_mode = #tpu.pipeline_mode<synchronous>, transform_indices = @transform_3, window_bounds = array<i64: 256, 256>}, {pipeline_mode = #tpu.pipeline_mode<synchronous>, transform_indices = @transform_4, window_bounds = array<i64: 1, 256>}, {pipeline_mode = #tpu.pipeline_mode<synchronous>, transform_indices = @transform_5, window_bounds = array<i64: 256, 256>}, {pipeline_mode = #tpu.pipeline_mode<synchronous>, transform_indices = @transform_6, window_bounds = array<i64: 1, 256>}, {pipeline_mode = #tpu.pipeline_mode<synchronous>, transform_indices = @transform_7, window_bounds = array<i64: 256, 128>}, {pipeline_mode = #tpu.pipeline_mode<synchronous>, transform_indices = @transform_8, window_bounds = array<i64: 1, 128>}, {transform_indices = @transform_9, window_bounds = array<i64: 2, 128>}]} {
    %c0 = arith.constant 0 : index
    %c0_0 = arith.constant 0 : index
    %0 = vector.load %arg1[%c0, %c0_0] : memref<2x8xf32, #tpu.memory_space<vmem>>, vector<2x8xf32>
    %1 = arith.truncf %0 : vector<2x8xf32> to vector<2x8xbf16>
    %c0_1 = arith.constant 0 : index
    %c0_2 = arith.constant 0 : index
    %2 = vector.load %arg2[%c0_1, %c0_2] : memref<8x256xbf16, #tpu.memory_space<vmem>>, vector<8x256xbf16>
    %cst = arith.constant dense<0.000000e+00> : vector<2x256xf32>
    %3 = tpu.matmul %1, %2, %cst {dimension_numbers = #tpu.dot_dimension_numbers<[1], [0], [0], [1], [0, 0, 1, 1], [], []>} : vector<2x8xbf16>, vector<8x256xbf16>, vector<2x256xf32> -> vector<2x256xf32>
    %c0_3 = arith.constant 0 : index
    %c0_4 = arith.constant 0 : index
    %4 = vector.load %arg3[%c0_3, %c0_4] : memref<1x256xf32, #tpu.memory_space<vmem>>, vector<1x256xf32>
    %5 = vector.broadcast %4 : vector<1x256xf32> to vector<2x256xf32>
    %6 = arith.addf %3, %5 : vector<2x256xf32>
    %cst_5 = arith.constant 0.000000e+00 : f32
    %7 = vector.broadcast %cst_5 : f32 to vector<2x256xf32>
    %8 = arith.maximumf %6, %7 : vector<2x256xf32>
    %9 = arith.truncf %8 : vector<2x256xf32> to vector<2x256xbf16>
    %c0_6 = arith.constant 0 : index
    %c0_7 = arith.constant 0 : index
    %10 = vector.load %arg4[%c0_6, %c0_7] : memref<256x256xbf16, #tpu.memory_space<vmem>>, vector<256x256xbf16>
    %cst_8 = arith.constant dense<0.000000e+00> : vector<2x256xf32>
    %11 = tpu.matmul %9, %10, %cst_8 {dimension_numbers = #tpu.dot_dimension_numbers<[1], [0], [0], [1], [0, 0, 1, 1], [], []>} : vector<2x256xbf16>, vector<256x256xbf16>, vector<2x256xf32> -> vector<2x256xf32>
    %c0_9 = arith.constant 0 : index
    %c0_10 = arith.constant 0 : index
    %12 = vector.load %arg5[%c0_9, %c0_10] : memref<1x256xf32, #tpu.memory_space<vmem>>, vector<1x256xf32>
    %13 = vector.broadcast %12 : vector<1x256xf32> to vector<2x256xf32>
    %14 = arith.addf %11, %13 : vector<2x256xf32>
    %cst_11 = arith.constant 0.000000e+00 : f32
    %15 = vector.broadcast %cst_11 : f32 to vector<2x256xf32>
    %16 = arith.maximumf %14, %15 : vector<2x256xf32>
    %17 = arith.truncf %16 : vector<2x256xf32> to vector<2x256xbf16>
    %c0_12 = arith.constant 0 : index
    %c0_13 = arith.constant 0 : index
    %18 = vector.load %arg6[%c0_12, %c0_13] : memref<256x256xbf16, #tpu.memory_space<vmem>>, vector<256x256xbf16>
    %cst_14 = arith.constant dense<0.000000e+00> : vector<2x256xf32>
    %19 = tpu.matmul %17, %18, %cst_14 {dimension_numbers = #tpu.dot_dimension_numbers<[1], [0], [0], [1], [0, 0, 1, 1], [], []>} : vector<2x256xbf16>, vector<256x256xbf16>, vector<2x256xf32> -> vector<2x256xf32>
    %c0_15 = arith.constant 0 : index
    %c0_16 = arith.constant 0 : index
    %20 = vector.load %arg7[%c0_15, %c0_16] : memref<1x256xf32, #tpu.memory_space<vmem>>, vector<1x256xf32>
    %21 = vector.broadcast %20 : vector<1x256xf32> to vector<2x256xf32>
    %22 = arith.addf %19, %21 : vector<2x256xf32>
    %cst_17 = arith.constant 0.000000e+00 : f32
    %23 = vector.broadcast %cst_17 : f32 to vector<2x256xf32>
    %24 = arith.maximumf %22, %23 : vector<2x256xf32>
    %25 = arith.truncf %24 : vector<2x256xf32> to vector<2x256xbf16>
    %c0_18 = arith.constant 0 : index
    %c0_19 = arith.constant 0 : index
    %26 = vector.load %arg8[%c0_18, %c0_19] : memref<256x128xbf16, #tpu.memory_space<vmem>>, vector<256x128xbf16>
    %cst_20 = arith.constant dense<0.000000e+00> : vector<2x128xf32>
    %27 = tpu.matmul %25, %26, %cst_20 {dimension_numbers = #tpu.dot_dimension_numbers<[1], [0], [0], [1], [0, 0, 1, 1], [], []>} : vector<2x256xbf16>, vector<256x128xbf16>, vector<2x128xf32> -> vector<2x128xf32>
    %c0_21 = arith.constant 0 : index
    %c0_22 = arith.constant 0 : index
    %28 = vector.load %arg9[%c0_21, %c0_22] : memref<1x128xf32, #tpu.memory_space<vmem>>, vector<1x128xf32>
    %29 = vector.broadcast %28 : vector<1x128xf32> to vector<2x128xf32>
    %30 = arith.addf %27, %29 : vector<2x128xf32>
    %c0_23 = arith.constant 0 : index
    %c0_24 = arith.constant 0 : index
    %31 = vector.load %arg10[%c0_23, %c0_24] : memref<2x128xf32, #tpu.memory_space<vmem>>, vector<2x128xf32>
    tpu.vector_store %arg10[%c0_23, %c0_24], %30 {strides = array<i32>} : memref<2x128xf32, #tpu.memory_space<vmem>>, vector<2x128xf32>,
    return
  }
  func.func @transform_0(%arg0: i32) -> (i32, i32) {
    %c0_i32 = arith.constant 0 : i32
    %c0_i32_0 = arith.constant 0 : i32
    return %arg0, %c0_i32 : i32, i32
  }
  func.func @transform_1(%arg0: i32) -> (i32, i32) {
    %c0_i32 = arith.constant 0 : i32
    %c0_i32_0 = arith.constant 0 : i32
    %c0_i32_1 = arith.constant 0 : i32
    return %c0_i32, %c0_i32_0 : i32, i32
  }
  func.func @transform_2(%arg0: i32) -> (i32, i32) {
    %c0_i32 = arith.constant 0 : i32
    %c0_i32_0 = arith.constant 0 : i32
    %c0_i32_1 = arith.constant 0 : i32
    return %c0_i32, %c0_i32_0 : i32, i32
  }
  func.func @transform_3(%arg0: i32) -> (i32, i32) {
    %c0_i32 = arith.constant 0 : i32
    %c0_i32_0 = arith.constant 0 : i32
    %c0_i32_1 = arith.constant 0 : i32
    return %c0_i32, %c0_i32_0 : i32, i32
  }
  func.func @transform_4(%arg0: i32) -> (i32, i32) {
    %c0_i32 = arith.constant 0 : i32
    %c0_i32_0 = arith.constant 0 : i32
    %c0_i32_1 = arith.constant 0 : i32
    return %c0_i32, %c0_i32_0 : i32, i32
  }
  func.func @transform_5(%arg0: i32) -> (i32, i32) {
    %c0_i32 = arith.constant 0 : i32
    %c0_i32_0 = arith.constant 0 : i32
    %c0_i32_1 = arith.constant 0 : i32
    return %c0_i32, %c0_i32_0 : i32, i32
  }
  func.func @transform_6(%arg0: i32) -> (i32, i32) {
    %c0_i32 = arith.constant 0 : i32
    %c0_i32_0 = arith.constant 0 : i32
    %c0_i32_1 = arith.constant 0 : i32
    return %c0_i32, %c0_i32_0 : i32, i32
  }
  func.func @transform_7(%arg0: i32) -> (i32, i32) {
    %c0_i32 = arith.constant 0 : i32
    %c0_i32_0 = arith.constant 0 : i32
    %c0_i32_1 = arith.constant 0 : i32
    return %c0_i32, %c0_i32_0 : i32, i32
  }
  func.func @transform_8(%arg0: i32) -> (i32, i32) {
    %c0_i32 = arith.constant 0 : i32
    %c0_i32_0 = arith.constant 0 : i32
    %c0_i32_1 = arith.constant 0 : i32
    return %c0_i32, %c0_i32_0 : i32, i32
  }
  func.func @transform_9(%arg0: i32) -> (i32, i32) {
    %c0_i32 = arith.constant 0 : i32
    %c0_i32_0 = arith.constant 0 : i32
    return %arg0, %c0_i32 : i32, i32
  }
}

</mosaic_0001>

<bundles_post_ra>
// kernel: mlp_forward.1
= control target key start
LH: loop header
LB: loop body
LE: loop exit
PB: predicated region body
PF: predicated region fallthrough
CT: control target
= control target key end

     0   :  { %14 = vsyncpa [#allocation3], 0  ;;  %s1354_s0 = inlined_call_operand.vmem [shape: f32[2,8], index: 0, kind: input, shape index: {}]   ;;  %s1355_s1 = inlined_call_operand.hbm [shape: bf16[8,256], index: 1, kind: input, shape index: {}]   ;;  %s1356_s2 = inlined_call_operand.vmem [shape: f32[1,256], index: 2, kind: input, shape index: {}]   ;;  %s1357_s3 = inlined_call_operand.hbm [shape: bf16[256,256], index: 3, kind: input, shape index: {}]   ;;  %s1358_s4 = inlined_call_operand.vmem [shape: f32[1,256], index: 4, kind: input, shape index: {}]   ;;  %s1359_s5 = inlined_call_operand.hbm [shape: bf16[256,256], index: 5, kind: input, shape index: {}]   ;;  %s1360_s6 = inlined_call_operand.vmem [shape: f32[1,256], index: 6, kind: input, shape index: {}]   ;;  %s1361_s7 = inlined_call_operand.hbm [shape: bf16[256,128], index: 7, kind: input, shape index: {}]   ;;  %s1362_s8 = inlined_call_operand.vmem [shape: f32[1,128], index: 8, kind: input, shape index: {}]   ;;  %s1363_s9 = inlined_call_operand.hbm [shape: f32[2,128], index: 9, kind: output, shape index: {}]  }
   0x1   :  { %15 = vsyncpa [#allocation6], 0 }
   0x2   :  { %16 = vsyncpa [#allocation9], 0 }
   0x3   :  { %17 = vsyncpa [#allocation4], 0  ;;  %s1203_s30 = smov [#allocation5]   ;;  %s1085_s13 = scalar_lea.hbm %s1357_s3, 4096 }
   0x4   :  { %s37_s10 = sshll.u32 %s1203_s30, 4  ;;  %p1086_p0 = scmp.ne.s32.totalorder %s1357_s3, %s1085_s13  ;;  %s38_s10 = int_to_ptr.vmem [resolvable:$true] %s37_s10 }
   0x5   :  { %p1089_p1 = scmp.lt.u32.totalorder %s1085_s13, %s1357_s3 }
   0x7   :  { %p1091_p2 = pnand %p1089_p1, %p1086_p0 }
   0x9   :  { %1094 = shalt.err (!%p1091_p2)
}
   0xa   :  { %s1095_s18 = scalar_lea.vmem %s38_s10, 4096  ;;  %p1100_p4 = scmp.lt.s32.totalorder %s38_s10, %s38_s10 }
   0xb   :  { %p1096_p3 = scmp.ne.s32.totalorder %s38_s10, %s1095_s18  ;;  %p1101_p5 = scmp.lt.s32.totalorder %s1095_s18, %s1095_s18 }
   0xd   :  { %p1102_p6 = por %p1101_p5, %p1100_p4 }
   0xf   :  { %p1103_p7 = pnand %p1102_p6, %p1096_p3 }
  0x11   :  { %1106 = shalt.err (!%p1103_p7)
}
  0x12   :  { %s1204_s19 = smov 128   ;;  %s1205_s20 = smov 8  }
  0x13   :  { %43 = dma.hbm_to_vmem [thread:$0]  %s1357_s3, 4096, %s38_s10, [#allocation6], %s1204_s19, %s1204_s19, %s1205_s20  }
  0x14   :  { %s1206_s23 = smov [#allocation2]   ;;  %s1207_s25 = smov [#allocation7]  }
  0x15   :  { %s26_s24 = sshll.u32 %s1206_s23, 4  ;;  %s51_s26 = sshll.u32 %s1207_s25, 4  ;;  %s27_s24 = int_to_ptr.vmem [resolvable:$true] %s26_s24  ;;  %s52_s26 = int_to_ptr.vmem [resolvable:$true] %s51_s26 }
  0x16   :  { %s1107_s29 = scalar_lea.hbm %s1355_s1, 128 }
  0x17   :  { %p1108_p8 = scmp.ne.s32.totalorder %s1355_s1, %s1107_s29  ;;  %p1111_p9 = scmp.lt.u32.totalorder %s1107_s29, %s1355_s1 }
  0x19   :  { %p1113_p10 = pnand %p1111_p9, %p1108_p8 }
  0x1b   :  { %1116 = shalt.err (!%p1113_p10)
}
  0x1c   :  { %s1117_s3 = scalar_lea.vmem %s27_s24, 128  ;;  %p1122_p12 = scmp.lt.s32.totalorder %s27_s24, %s27_s24 }
  0x1d   :  { %p1118_p11 = scmp.ne.s32.totalorder %s27_s24, %s1117_s3  ;;  %p1123_p13 = scmp.lt.s32.totalorder %s1117_s3, %s1117_s3 }
  0x1f   :  { %p1124_p0 = por %p1123_p13, %p1122_p12 }
  0x21   :  { %p1125_p1 = pnand %p1124_p0, %p1118_p11 }
  0x23   :  { %1128 = shalt.err (!%p1125_p1)
}
  0x24   :  { %29 = dma.hbm_to_vmem [thread:$0]  %s1355_s1, 128, %s27_s24, [#allocation3]  }
  0x25   :  { %s1129_s17 = scalar_lea.hbm %s1359_s5, 4096 }
  0x26   :  { %p1130_p2 = scmp.ne.s32.totalorder %s1359_s5, %s1129_s17  ;;  %p1133_p3 = scmp.lt.u32.totalorder %s1129_s17, %s1359_s5 }
  0x28   :  { %p1135_p4 = pnand %p1133_p3, %p1130_p2 }
  0x2a   :  { %1138 = shalt.err (!%p1135_p4)
}
  0x2b   :  { %s1139_s25 = scalar_lea.vmem %s52_s26, 4096  ;;  %p1144_p6 = scmp.lt.s32.totalorder %s52_s26, %s52_s26 }
  0x2c   :  { %p1140_p5 = scmp.ne.s32.totalorder %s52_s26, %s1139_s25  ;;  %p1145_p7 = scmp.lt.s32.totalorder %s1139_s25, %s1139_s25 }
  0x2e   :  { %p1146_p8 = por %p1145_p7, %p1144_p6 }
  0x30   :  { %p1147_p9 = pnand %p1146_p8, %p1140_p5 }
  0x32   :  { %1150 = shalt.err (!%p1147_p9)
}
  0x33   :  { %57 = dma.hbm_to_vmem [thread:$0]  %s1359_s5, 4096, %s52_s26, [#allocation6], %s1204_s19, %s1204_s19, %s1205_s20  }
  0x34   :  { %s1208_s27 = smov [#allocation8]   ;;  %s1151_s11 = scalar_lea.hbm %s1361_s7, 2048 }
  0x35   :  { %s65_s28 = sshll.u32 %s1208_s27, 4  ;;  %p1152_p10 = scmp.ne.s32.totalorder %s1361_s7, %s1151_s11  ;;  %s66_s28 = int_to_ptr.vmem [resolvable:$true] %s65_s28 }
  0x36   :  { %p1155_p11 = scmp.lt.u32.totalorder %s1151_s11, %s1361_s7 }
  0x38   :  { %p1157_p12 = pnand %p1155_p11, %p1152_p10 }
  0x3a   :  { %1160 = shalt.err (!%p1157_p12)
}
  0x3b   :  { %s1161_s14 = scalar_lea.vmem %s66_s28, 2048  ;;  %p1166_p0 = scmp.lt.s32.totalorder %s66_s28, %s66_s28 }
  0x3c   :  { %p1162_p13 = scmp.ne.s32.totalorder %s66_s28, %s1161_s14  ;;  %p1167_p1 = scmp.lt.s32.totalorder %s1161_s14, %s1161_s14 }
  0x3e   :  { %p1168_p2 = por %p1167_p1, %p1166_p0 }
  0x40   :  { %p1169_p3 = pnand %p1168_p2, %p1162_p13 }
  0x42   :  { %1172 = shalt.err (!%p1169_p3)
}
  0x43   :  { %s1209_s5 = smov 64   ;;  %s1210_s19 = smov 4  }
  0x44   :  { %71 = dma.hbm_to_vmem [thread:$0]  %s1361_s7, 2048, %s66_s28, [#allocation9], %s1209_s5, %s1209_s5, %s1210_s19  }
  0x45   :  { %1195 = dma.done.wait [#allocation3], 128  }
  0x46   :  { %1196 = vsyncadd [#allocation3], 4294967168 }
  0x47   :  { %1197 = dma.done.wait [#allocation6], 8192  }
  0x48   :  { %1198 = vsyncadd [#allocation6], 4294959104 }
  0x49   :  { %1199 = dma.done.wait [#allocation9], 2048  }
  0x4a   :  { %1200 = vsyncadd [#allocation9], 4294965248  ;;  %v1211_v0 = vmov 0   ;;  %v89_v1 = vld [vmem:[#allocation2] sm:$0xff]  ;;  %vm111_vm0 = vcmask 1043456   ;;  %vm107_vm1 = vcmask 64512  }
  0x4b   :  { %150 = vmatprep.mubr.bf16.mxu0 %v1211_v0  ;;  %v87_v2 = vld [vmem:[%s1354_s0] sm:$0x3]  ;;  %v855_v3 = vcombine.high %v89_v1, %v89_v1  ;;  %v854_v4 = vcombine.low %v89_v1, %v89_v1  ;;  %v973_v5 = vld [vmem:[#allocation5 + $0x4] ss:$8 sps:$4 sm:$0xff]   ;;  %v975_v6 = vld [vmem:[#allocation5] ss:$8 sps:$4 sm:$0xff]  }
  0x4c   :  { %v976_v7 = vld [vmem:[#allocation5 + $0x14] ss:$8 sps:$4 sm:$0xff]   ;;  %v88_v9 = vpack.c.bf16 %v87_v2, %v87_v2  ;;  %367 = vmatprep.subr.bf16.mxu1 %v973_v5  ;;  %v978_v10 = vld [vmem:[#allocation5 + $0x10] ss:$8 sps:$4 sm:$0xff]   ;;  %v979_v11 = vld [vmem:[#allocation5 + $0x24] ss:$8 sps:$4 sm:$0xff]  }
  0x4d   :  { %856 = vmatprep.subr.msk.bf16.mxu0 %vm111_vm0, %v855_v3  ;;  %v113_v8 = vsel %vm111_vm0, %v854_v4, 0  ;;  %368 = vmatpush1.bf16.msra.mxu1 %v975_v6  ;;  %v981_v12 = vld [vmem:[#allocation5 + $0x20] ss:$8 sps:$4 sm:$0xff]   ;;  %v982_v13 = vld [vmem:[#allocation5 + $0x34] ss:$8 sps:$4 sm:$0xff]   ;;  %v92_v3 = vlaneseq }
  0x4e   :  { %119 = vmatpush1.bf16.msra.mxu0 %v113_v8  ;;  %369 = vmatprep.subr.bf16.mxu1 %v976_v7  ;;  %v984_v14 = vld [vmem:[#allocation5 + $0x30] ss:$8 sps:$4 sm:$0xff]   ;;  %v985_v15 = vld [vmem:[#allocation5 + $0x44] ss:$8 sps:$4 sm:$0xff]   ;;  %v987_v16 = vld [vmem:[#allocation5 + $0x40] ss:$8 sps:$4 sm:$0xff]  }
  0x4f   :  { %v988_v17 = vld [vmem:[#allocation5 + $0x54] ss:$8 sps:$4 sm:$0xff]   ;;  %v990_v18 = vld [vmem:[#allocation5 + $0x50] ss:$8 sps:$4 sm:$0xff]   ;;  %v991_v19 = vld [vmem:[#allocation5 + $0x64] ss:$8 sps:$4 sm:$0xff]  }
  0x50   :  { %v993_v20 = vld [vmem:[#allocation5 + $0x60] ss:$8 sps:$4 sm:$0xff]   ;;  %v994_v21 = vld [vmem:[#allocation5 + $0x74] ss:$8 sps:$4 sm:$0xff]   ;;  %v996_v22 = vld [vmem:[#allocation5 + $0x70] ss:$8 sps:$4 sm:$0xff]  }
  0x51   :  { %857 = vmatmul.mubr.msk.bf16.vlgmr.msra.gmra.mrb[0].mxu0 %vm107_vm1, %v88_v9  ;;  %370 = vmatpush1.bf16.msra.mxu1 %v978_v10  ;;  %v997_v23 = vld [vmem:[#allocation5 + $0x84] ss:$8 sps:$4 sm:$0xff]   ;;  %v999_v24 = vld [vmem:[#allocation5 + $0x80] ss:$8 sps:$4 sm:$0xff]   ;;  %v1000_v25 = vld [vmem:[#allocation5 + $0x94] ss:$8 sps:$4 sm:$0xff]  }
  0x52   :  { %371 = vmatprep.subr.bf16.mxu1 %v979_v11  ;;  %v1002_v26 = vld [vmem:[#allocation5 + $0x90] ss:$8 sps:$4 sm:$0xff]   ;;  %v1003_v27 = vld [vmem:[#allocation5 + $0xa4] ss:$8 sps:$4 sm:$0xff]   ;;  %v1005_v28 = vld [vmem:[#allocation5 + $0xa0] ss:$8 sps:$4 sm:$0xff]  }
  0x53   :  { %v1006_v29 = vld [vmem:[#allocation5 + $0xb4] ss:$8 sps:$4 sm:$0xff]   ;;  %v1008_v30 = vld [vmem:[#allocation5 + $0xb0] ss:$8 sps:$4 sm:$0xff]   ;;  %v1009_v31 = vld [vmem:[#allocation5 + $0xc4] ss:$8 sps:$4 sm:$0xff]  }
  0x54   :  { %v1011_v32 = vld [vmem:[#allocation5 + $0xc0] ss:$8 sps:$4 sm:$0xff]   ;;  %v1012_v33 = vld [vmem:[#allocation5 + $0xd4] ss:$8 sps:$4 sm:$0xff]   ;;  %v1014_v34 = vld [vmem:[#allocation5 + $0xd0] ss:$8 sps:$4 sm:$0xff]  }
  0x55   :  { %372 = vmatpush1.bf16.msra.mxu1 %v981_v12  ;;  %v1015_v35 = vld [vmem:[#allocation5 + $0xe4] ss:$8 sps:$4 sm:$0xff]   ;;  %v1017_v36 = vld [vmem:[#allocation5 + $0xe0] ss:$8 sps:$4 sm:$0xff]   ;;  %v1018_v37 = vld [vmem:[#allocation5 + $0xf4] ss:$8 sps:$4 sm:$0xff]  }
  0x56   :  { %373 = vmatprep.subr.bf16.mxu1 %v982_v13  ;;  %v1020_v38 = vld [vmem:[#allocation5 + $0xf0] ss:$8 sps:$4 sm:$0xff]   ;;  %v1021_v39 = vld [vmem:[#allocation7] ss:$8 sps:$4 sm:$0xff]   ;;  %v1023_v40 = vld [vmem:[#allocation7 + $0x4] ss:$8 sps:$4 sm:$0xff]  }
  0x57   :  { %v1026_v41 = vld [vmem:[#allocation7 + $0x14] ss:$8 sps:$4 sm:$0xff]   ;;  %616 = vmatprep.subr.bf16.mxu0 %v1023_v40  ;;  %v1024_v42 = vld [vmem:[#allocation7 + $0x10] ss:$8 sps:$4 sm:$0xff]   ;;  %v1029_v43 = vld [vmem:[#allocation7 + $0x24] ss:$8 sps:$4 sm:$0xff]  }
  0x58   :  { %617 = vmatpush1.bf16.msra.mxu0 %v1021_v39  ;;  %v1027_v44 = vld [vmem:[#allocation7 + $0x20] ss:$8 sps:$4 sm:$0xff]   ;;  %v1032_v45 = vld [vmem:[#allocation7 + $0x34] ss:$8 sps:$4 sm:$0xff]   ;;  %v1030_v46 = vld [vmem:[#allocation7 + $0x30] ss:$8 sps:$4 sm:$0xff]  }
  0x59   :  { %374 = vmatpush1.bf16.msra.mxu1 %v984_v14  ;;  %618 = vmatprep.subr.bf16.mxu0 %v1026_v41  ;;  %v1035_v47 = vld [vmem:[#allocation7 + $0x44] ss:$8 sps:$4 sm:$0xff]   ;;  %v1033_v48 = vld [vmem:[#allocation7 + $0x40] ss:$8 sps:$4 sm:$0xff]   ;;  %v1038_v49 = vld [vmem:[#allocation7 + $0x54] ss:$8 sps:$4 sm:$0xff]  }
  0x5a   :  { %375 = vmatprep.subr.bf16.mxu1 %v985_v15  ;;  %v1036_v50 = vld [vmem:[#allocation7 + $0x50] ss:$8 sps:$4 sm:$0xff]   ;;  %v1041_v51 = vld [vmem:[#allocation7 + $0x64] ss:$8 sps:$4 sm:$0xff]   ;;  %v1039_v52 = vld [vmem:[#allocation7 + $0x60] ss:$8 sps:$4 sm:$0xff]  }
  0x5b   :  { %v1044_v53 = vld [vmem:[#allocation7 + $0x74] ss:$8 sps:$4 sm:$0xff]   ;;  %v1042_v54 = vld [vmem:[#allocation7 + $0x70] ss:$8 sps:$4 sm:$0xff]   ;;  %v1047_v55 = vld [vmem:[#allocation7 + $0x84] ss:$8 sps:$4 sm:$0xff]  }
  0x5c   :  { %619 = vmatpush1.bf16.msra.mxu0 %v1024_v42  ;;  %v1045_v56 = vld [vmem:[#allocation7 + $0x80] ss:$8 sps:$4 sm:$0xff]   ;;  %v1050_v57 = vld [vmem:[#allocation7 + $0x94] ss:$8 sps:$4 sm:$0xff]   ;;  %v1048_v58 = vld [vmem:[#allocation7 + $0x90] ss:$8 sps:$4 sm:$0xff]  }
  0x5d   :  { %376 = vmatpush1.bf16.msra.mxu1 %v987_v16  ;;  %620 = vmatprep.subr.bf16.mxu0 %v1029_v43  ;;  %v1053_v59 = vld [vmem:[#allocation7 + $0xa4] ss:$8 sps:$4 sm:$0xff]   ;;  %v1051_v60 = vld [vmem:[#allocation7 + $0xa0] ss:$8 sps:$4 sm:$0xff]   ;;  %v1056_v61 = vld [vmem:[#allocation7 + $0xb4] ss:$8 sps:$4 sm:$0xff]  }
  0x5e   :  { %377 = vmatprep.subr.bf16.mxu1 %v988_v17  ;;  %v1054_v62 = vld [vmem:[#allocation7 + $0xb0] ss:$8 sps:$4 sm:$0xff]   ;;  %v1059_v63 = vld [vmem:[#allocation7 + $0xc4] ss:$8 sps:$4 sm:$0xff]   ;;  %v1057_v0 = vld [vmem:[#allocation7 + $0xc0] ss:$8 sps:$4 sm:$0xff]  }
  0x5f   :  { %v1062_v1 = vld [vmem:[#allocation7 + $0xd4] ss:$8 sps:$4 sm:$0xff]   ;;  %v1060_v2 = vld [vmem:[#allocation7 + $0xd0] ss:$8 sps:$4 sm:$0xff]   ;;  %v93_v4 = vshrl.u32 %v92_v3, 7 }
  0x60   :  { %621 = vmatpush1.bf16.msra.mxu0 %v1027_v44  ;;  %v90_v6 = vld [vmem:[%s1356_s2] sm:$0x3] }
  0x61   :  { %378 = vmatpush1.bf16.msra.mxu1 %v990_v18  ;;  %622 = vmatprep.subr.bf16.mxu0 %v1032_v45  ;;  %v1320_v5 = vsub.s32 0, %v93_v4  ;;  %v1325_v7 = vsub.s32 1, %v93_v4  ;;  %v922_v3 = vld [vmem:[%s1362_s8] ss:$0 sm:$0xff] }
  0x62   :  { %379 = vmatprep.subr.bf16.mxu1 %v991_v19 }
  0x63   :  { %v95_v8 = vrot.slane %v90_v6, %v1320_v5  ;;  %v99_v9 = vrot.slane %v90_v6, %v1325_v7 }
  0x64   :  { %623 = vmatpush1.bf16.msra.mxu0 %v1030_v46 }
  0x65   :  { %380 = vmatpush1.bf16.msra.mxu1 %v993_v20  ;;  %624 = vmatprep.subr.bf16.mxu0 %v1035_v47  ;;  %v1065_v20 = vld [vmem:[#allocation7 + $0xe4] ss:$8 sps:$4 sm:$0xff]  }
  0x66   :  { %381 = vmatprep.subr.bf16.mxu1 %v994_v21  ;;  %v1063_v21 = vld [vmem:[#allocation7 + $0xe0] ss:$8 sps:$4 sm:$0xff]  }
  0x68   :  { %625 = vmatpush1.bf16.msra.mxu0 %v1033_v48 }
  0x69   :  { %382 = vmatpush1.bf16.msra.mxu1 %v996_v22  ;;  %626 = vmatprep.subr.bf16.mxu0 %v1038_v49  ;;  %v1068_v22 = vld [vmem:[#allocation7 + $0xf4] ss:$8 sps:$4 sm:$0xff]  }
  0x6a   :  { %383 = vmatprep.subr.bf16.mxu1 %v997_v23  ;;  %v1066_v23 = vld [vmem:[#allocation7 + $0xf0] ss:$8 sps:$4 sm:$0xff]  }
  0x6b   :  { %v1081_v49 = vld [vmem:[#allocation8 + $0x70] sm:$0xff]  }
  0x6c   :  { %627 = vmatpush1.bf16.msra.mxu0 %v1036_v50  ;;  %v1082_v50 = vld [vmem:[#allocation8 + $0x30] sm:$0xff]  }
  0x6d   :  { %384 = vmatpush1.bf16.msra.mxu1 %v999_v24  ;;  %628 = vmatprep.subr.bf16.mxu0 %v1041_v51  ;;  %v1069_v24 = vld [vmem:[#allocation8 + $0x40] sm:$0xff]   ;;  %v1083_v51 = vld [vmem:[#allocation8 + $0x78] sm:$0xff]  }
  0x6e   :  { %385 = vmatprep.subr.bf16.mxu1 %v1000_v25  ;;  %v1070_v25 = vld [vmem:[#allocation8] sm:$0xff]  }
  0x70   :  { %629 = vmatpush1.bf16.msra.mxu0 %v1039_v52  ;;  %v1084_v52 = vld [vmem:[#allocation8 + $0x38] sm:$0xff]  }
  0x71   :  { %386 = vmatpush1.bf16.msra.mxu1 %v1002_v26  ;;  %630 = vmatprep.subr.bf16.mxu0 %v1044_v53  ;;  %v1071_v26 = vld [vmem:[#allocation8 + $0x48] sm:$0xff]   ;;  %v444_v53 = vld [vmem:[%s1360_s6] sm:$0x3]  ;;  %s1212_s6 = smov [#allocation10]  }
  0x72   :  { %387 = vmatprep.subr.bf16.mxu1 %v1003_v27  ;;  %v1072_v27 = vld [vmem:[#allocation8 + $0x8] sm:$0xff]   ;;  %s843_s23 = sshll.u32 %s1212_s6, 4  ;;  %s844_s23 = int_to_ptr.vmem [resolvable:$true] %s843_s23 }
  0x73   :  { %s1173_s25 = scalar_lea.vmem %s844_s23, 32  ;;  %p1178_p5 = scmp.lt.s32.totalorder %s844_s23, %s844_s23 }
  0x74   :  { %631 = vmatpush1.bf16.msra.mxu0 %v1042_v54  ;;  %v449_v54 = vrot.slane %v444_v53, %v1320_v5  ;;  %p1174_p4 = scmp.ne.s32.totalorder %s844_s23, %s1173_s25  ;;  %p1179_p6 = scmp.lt.s32.totalorder %s1173_s25, %s1173_s25 }
  0x75   :  { %388 = vmatpush1.bf16.msra.mxu1 %v1005_v28  ;;  %632 = vmatprep.subr.bf16.mxu0 %v1047_v55  ;;  %v1073_v28 = vld [vmem:[#allocation8 + $0x50] sm:$0xff]   ;;  %v453_v55 = vrot.slane %v444_v53, %v1325_v7 }
  0x76   :  { %389 = vmatprep.subr.bf16.mxu1 %v1006_v29  ;;  %v1074_v29 = vld [vmem:[#allocation8 + $0x10] sm:$0xff]   ;;  %p1180_p7 = por %p1179_p6, %p1178_p5 }
  0x78   :  { %633 = vmatpush1.bf16.msra.mxu0 %v1045_v56  ;;  %p1181_p8 = pnand %p1180_p7, %p1174_p4 }
  0x79   :  { %390 = vmatpush1.bf16.msra.mxu1 %v1008_v30  ;;  %634 = vmatprep.subr.bf16.mxu0 %v1050_v57  ;;  %v1075_v30 = vld [vmem:[#allocation8 + $0x58] sm:$0xff]  }
  0x7a   :  { %391 = vmatprep.subr.bf16.mxu1 %v1009_v31  ;;  %v1076_v31 = vld [vmem:[#allocation8 + $0x18] sm:$0xff]  }
  0x7c   :  { %635 = vmatpush1.bf16.msra.mxu0 %v1048_v58 }
  0x7d   :  { %392 = vmatpush1.bf16.msra.mxu1 %v1011_v32  ;;  %636 = vmatprep.subr.bf16.mxu0 %v1053_v59  ;;  %v1077_v32 = vld [vmem:[#allocation8 + $0x60] sm:$0xff]  }
  0x7e   :  { %393 = vmatprep.subr.bf16.mxu1 %v1012_v33  ;;  %v1078_v33 = vld [vmem:[#allocation8 + $0x20] sm:$0xff]  }
  0x80   :  { %637 = vmatpush1.bf16.msra.mxu0 %v1051_v60 }
  0x81   :  { %394 = vmatpush1.bf16.msra.mxu1 %v1014_v34  ;;  %638 = vmatprep.subr.bf16.mxu0 %v1056_v61  ;;  %v1079_v34 = vld [vmem:[#allocation8 + $0x68] sm:$0xff]  }
  0x82   :  { %395 = vmatprep.subr.bf16.mxu1 %v1015_v35  ;;  %v1080_v35 = vld [vmem:[#allocation8 + $0x28] sm:$0xff]  }
  0x84   :  { %639 = vmatpush1.bf16.msra.mxu0 %v1054_v62 }
  0x85   :  { %396 = vmatpush1.bf16.msra.mxu1 %v1017_v36  ;;  %640 = vmatprep.subr.bf16.mxu0 %v1059_v63  ;;  %v195_v36 = vld [vmem:[%s1358_s4] sm:$0x3] }
  0x86   :  { %397 = vmatprep.subr.bf16.mxu1 %v1018_v37  ;;  %v200_v37 = vrot.slane %v195_v36, %v1320_v5 }
  0x88   :  { %641 = vmatpush1.bf16.msra.mxu0 %v1057_v0 }
  0x89   :  { %398 = vmatpush1.bf16.msra.mxu1 %v1020_v38  ;;  %642 = vmatprep.subr.bf16.mxu0 %v1062_v1  ;;  %v204_v38 = vrot.slane %v195_v36, %v1325_v7 }
  0x8a   :  { %939 = vmatprep.subr.bf16.mxu1 %v1069_v24 }
  0x8c   :  { %643 = vmatpush1.bf16.msra.mxu0 %v1060_v2 }
  0x8d   :  { %644 = vmatprep.subr.bf16.mxu0 %v1065_v20 }
  0x90   :  { %645 = vmatpush1.bf16.msra.mxu0 %v1063_v21 }
  0x91   :  { %646 = vmatprep.subr.bf16.mxu0 %v1068_v22 }
  0x94   :  { %647 = vmatpush1.bf16.msra.mxu0 %v1066_v23 }
 0x124   :  { %v152_v10 = vpop.f32.mrb[0].mxu0 }
 0x125   :  { %v153_v11 = vadd.f32 %v152_v10, %v95_v8  ;;  %v154_v12 = vpop.f32.mrb[1].mxu0 }
 0x126   :  { %v155_v13 = vadd.f32 %v154_v12, %v99_v9  ;;  %v156_v14 = vpop.f32.mrb[2].mxu0 }
 0x127   :  { %v159_v15 = vmax.f32 %v153_v11, 0.0  ;;  %v157_v16 = vpop.f32.mrb[3].mxu0 }
 0x128   :  { %v160_v17 = vmax.f32 %v155_v13, 0.0 }
 0x129   :  { %v161_v19 = vpack.c.bf16 %v159_v15, %v159_v15 }
 0x12a   :  { %v162_v18 = vpack.c.bf16 %v160_v17, %v160_v17 }
 0x12c   :  { %399 = vmatprep.mubr.bf16.mxu1 %v162_v18 }
 0x12d   :  { %400 = vmatmul.mubr.bf16.vlgmr.msra.gmra.mrb[0].mxu1 %v161_v19 }
 0x12e   :  { %940 = vmatpush3.bf16.msra.mxu1 %v1070_v25 }
 0x12f   :  { %941 = vmatprep.subr.bf16.mxu1 %v1071_v26 }
 0x132   :  { %942 = vmatpush3.bf16.msra.mxu1 %v1072_v27 }
 0x133   :  { %943 = vmatprep.subr.bf16.mxu1 %v1073_v28 }
 0x136   :  { %944 = vmatpush3.bf16.msra.mxu1 %v1074_v29 }
 0x137   :  { %945 = vmatprep.subr.bf16.mxu1 %v1075_v30 }
 0x13a   :  { %946 = vmatpush3.bf16.msra.mxu1 %v1076_v31 }
 0x13b   :  { %947 = vmatprep.subr.bf16.mxu1 %v1077_v32 }
 0x13e   :  { %948 = vmatpush3.bf16.msra.mxu1 %v1078_v33 }
 0x13f   :  { %949 = vmatprep.subr.bf16.mxu1 %v1079_v34 }
 0x142   :  { %950 = vmatpush3.bf16.msra.mxu1 %v1080_v35 }
 0x143   :  { %951 = vmatprep.subr.bf16.mxu1 %v1081_v49 }
 0x146   :  { %952 = vmatpush3.bf16.msra.mxu1 %v1082_v50 }
 0x147   :  { %953 = vmatprep.subr.bf16.mxu1 %v1083_v51 }
 0x14a   :  { %954 = vmatpush3.bf16.msra.mxu1 %v1084_v52 }
 0x200   :  { %v401_v39 = vpop.f32.mrb[0].mxu1 }
 0x201   :  { %v402_v40 = vadd.f32 %v401_v39, %v200_v37  ;;  %v403_v41 = vpop.f32.mrb[1].mxu1 }
 0x202   :  { %v404_v42 = vadd.f32 %v403_v41, %v204_v38  ;;  %v405_v43 = vpop.f32.mrb[2].mxu1 }
 0x203   :  { %v408_v44 = vmax.f32 %v402_v40, 0.0  ;;  %v406_v45 = vpop.f32.mrb[3].mxu1 }
 0x204   :  { %v409_v46 = vmax.f32 %v404_v42, 0.0 }
 0x205   :  { %v410_v48 = vpack.c.bf16 %v408_v44, %v408_v44 }
 0x206   :  { %v411_v47 = vpack.c.bf16 %v409_v46, %v409_v46 }
 0x208   :  { %648 = vmatprep.mubr.bf16.mxu0 %v411_v47 }
 0x209   :  { %649 = vmatmul.mubr.bf16.vlgmr.msra.gmra.mrb[4].mxu0 %v410_v48 }
 0x2dc   :  { %v650_v56 = vpop.f32.mrb[4].mxu0 }
 0x2dd   :  { %v651_v57 = vadd.f32 %v650_v56, %v449_v54  ;;  %v652_v58 = vpop.f32.mrb[5].mxu0 }
 0x2de   :  { %v653_v59 = vadd.f32 %v652_v58, %v453_v55  ;;  %v654_v60 = vpop.f32.mrb[6].mxu0 }
 0x2df   :  { %v657_v61 = vmax.f32 %v651_v57, 0.0  ;;  %v655_v62 = vpop.f32.mrb[7].mxu0 }
 0x2e0   :  { %v658_v63 = vmax.f32 %v653_v59, 0.0 }
 0x2e1   :  { %v659_v1 = vpack.c.bf16 %v657_v61, %v657_v61 }
 0x2e2   :  { %v660_v0 = vpack.c.bf16 %v658_v63, %v658_v63 }
 0x2e4   :  { %828 = vmatprep.mubr.bf16.mxu1 %v660_v0 }
 0x2e5   :  { %829 = vmatmul.mubr.bf16.vlgmr.msra.gmra.mrb[4].mxu1 %v659_v1 }
 0x3b8   :  { %v955_v2 = vpop.f32.mrb[4].mxu1 }
 0x3b9   :  { %v956_v4 = vpop.f32.mrb[5].mxu1 }
 0x3ba   :  { %v957_v5 = vadd.f32 %v956_v4, %v955_v2  ;;  %v958_v6 = vpop.f32.mrb[6].mxu1 }
 0x3bb   :  { %v959_v7 = vpop.f32.mrb[7].mxu1 }
 0x3bc   :  { %v831_v8 = vadd.f32 %v957_v5, %v922_v3 }
 0x3be   :  { %836 = vst [vmem:[#allocation10] sm:$0x3] %v831_v8 }
 0x3bf   :  { %1184 = shalt.err (!%p1181_p8)
}
 0x3c0   :  { %s1185_s8 = scalar_lea.hbm %s1363_s9, 32 }
 0x3c1   :  { %p1186_p9 = scmp.ne.s32.totalorder %s1363_s9, %s1185_s8  ;;  %p1189_p10 = scmp.lt.u32.totalorder %s1185_s8, %s1363_s9 }
 0x3c3   :  { %p1191_p11 = pnand %p1189_p10, %p1186_p9 }
 0x3c5   :  { %1194 = shalt.err (!%p1191_p11)
}
 0x3c6   :  { %846 = dma.vmem_to_hbm [thread:$0]  %s844_s23, 32, %s1363_s9, [#allocation4]  }
 0x3c7   :  { %1201 = dma.done.wait [#allocation4], 32  }
 0x3c8   :  { %1202 = vsyncadd [#allocation4], 4294967264 }
 0x3c9   :  { %850 = vsyncpa [#allocation3], 1 }
 0x3ca   :  { %851 = vsyncpa [#allocation6], 1 }
 0x3cb   :  { %852 = vsyncpa [#allocation9], 1 }
 0x3cc   :  { %853 = vsyncpa [#allocation4], 1 }

</bundles_post_ra>
